<compile_context>
chip_gen: v6e
topology: v6e:2x2x1
jax: 0.10.0
libtpu: 0.0.40
codegen_flags: <defaults>
</compile_context>

<pallas_src>
import functools

import jax
import jax.numpy as jnp
from jax import lax
from jax.experimental import pallas as pl
from jax.experimental.pallas import tpu as pltpu


NUM_BLOCK = 3   # GoodLuck default
NUM_LAYER = 0   # GoodLuck default -> TransformerLayerAbs loops are empty


# ----------------------------------------------------------------------------
# Fused kernel
#   grid = (N_tiles, L_tiles);  L is the streamed reduction axis ("arbitrary")
#   conv_ref : (TN, TL, H)  bf16 slab of BERT token embeddings
#   wp/bp    : (H, D) / (1, D)   projection (resident, f32)
#   pe_ref   : (TN, D)           positional-encoding rows for this N tile
#   wc/bc    : (D, C) / (1, C)   classifier (resident, f32)
#   out_ref  : (TN, C)           log-probabilities
#   pool_acc : (TN, H)           running max-pool accumulator (VMEM scratch, f32)
# ----------------------------------------------------------------------------
def goodluck_kernel(conv_ref, wp_ref, bp_ref, pe_ref, wc_ref, bc_ref,
                    out_ref, pool_acc, *, seq_len, tile_l, mask_l):
    l = pl.program_id(1)
    nl = pl.num_programs(1)

    @pl.when(l == 0)
    def _init():
        pool_acc[...] = jnp.full_like(pool_acc, -jnp.inf)

    if mask_l:
        # Only the final L tile carries padding; keep the mask off the hot path.
        @pl.when(l == nl - 1)
        def _edge_tile():
            emb = conv_ref[...].astype(jnp.float32)            # (TN, TL, H)
            pos = l * tile_l + lax.broadcasted_iota(jnp.int32, (1, tile_l, 1), 1)
            emb = jnp.where(pos < seq_len, emb, -jnp.inf)
            pool_acc[...] = jnp.maximum(pool_acc[...], jnp.max(emb, axis=1))

        @pl.when(l != nl - 1)
        def _body_tile():
            emb = conv_ref[...].astype(jnp.float32)
            pool_acc[...] = jnp.maximum(pool_acc[...], jnp.max(emb, axis=1))
    else:
        emb = conv_ref[...].astype(jnp.float32)
        pool_acc[...] = jnp.maximum(pool_acc[...], jnp.max(emb, axis=1))

    @pl.when(l == nl - 1)
    def _epilogue():
        pooled = pool_acc[...]                                 # (TN, H) f32
        src = (jnp.dot(pooled, wp_ref[...],
                       preferred_element_type=jnp.float32)
               + bp_ref[...] + pe_ref[...])                    # (TN, D)

        # num_layer == 0  =>  all NUM_BLOCK block outputs equal `src`, so
        # FusionAttention's softmax is uniform (1/NUM_BLOCK) and the weighted
        # sum collapses exactly to `src`.
        fused = src

        logits = (jnp.dot(fused, wc_ref[...],
                          preferred_element_type=jnp.float32)
                  + bc_ref[...])                               # (TN, C)
        lmax = jnp.max(logits, axis=-1, keepdims=True)
        lse = jnp.log(jnp.sum(jnp.exp(logits - lmax), axis=-1,
                              keepdims=True)) + lmax
        out_ref[...] = logits - lse


# ----------------------------------------------------------------------------
# Tiling / VMEM sizing
# ----------------------------------------------------------------------------
def _round_up(x, m):
    return ((x + m - 1) // m) * m


def _vmem_capacity_bytes():
    try:
        return int(pltpu.get_tpu_info().vmem_capacity_bytes)
    except Exception:
        return 64 << 20        # conservative v7x per-TC floor


def _pick_tiles(n, l, h, vmem_cap, conv_itemsize):
    # L tile: full sequence if short; otherwise split into balanced slabs
    # (multiple of 16 for bf16 sublane packing) so the masked edge path is
    # statically disabled whenever possible.
    if l <= 512:
        tl = l
    else:
        nchunks = pl.cdiv(l, 512)
        tl = min(l, _round_up(pl.cdiv(l, nchunks), 16))

    # Conv slab budget: exploit the 128 MiB VMEM parts (v5e/v6e); stay
    # conservative on v7x's 64 MiB per TensorCore.
    if vmem_cap > (64 << 20):
        budget = vmem_cap // 2
    else:
        budget = vmem_cap // 3

    tn = budget // (2 * tl * h * conv_itemsize)       # double-buffered slabs
    tn = max(8, (tn // 8) * 8)
    tn = min(tn, _round_up(n, 8))
    return tn, tl


# ----------------------------------------------------------------------------
# Forward
# ----------------------------------------------------------------------------
@jax.jit
def goodluck_forward(conv_emb, params):
    # Prefer producing conv_emb in bf16 upstream; cast here only as a fallback.
    if conv_emb.dtype != jnp.bfloat16:
        conv_emb = conv_emb.astype(jnp.bfloat16)

    N, L, H = conv_emb.shape
    D = params["wp"].shape[1]
    C = params["wc"].shape[1]
    max_len = params["pe"].shape[0]
    if N > max_len:
        raise ValueError(f"src_len {N} exceeds positional-encoding max_len {max_len}")

    conv_itemsize = jnp.dtype(conv_emb.dtype).itemsize
    vmem_cap = _vmem_capacity_bytes()
    tn, tl = _pick_tiles(N, L, H, vmem_cap, conv_itemsize)
    grid = (pl.cdiv(N, tn), pl.cdiv(L, tl))
    mask_l = (L % tl) != 0

    # Explicit VMEM budget: Pallas double-buffers every input (including the
    # constant-index weights); leave headroom for Mosaic internal scratch and
    # the epilogue temporaries.
    need_bytes = (2 * tn * tl * H * conv_itemsize        # conv_emb slabs
                  + 2 * (tn * D + tn * C) * 4            # pe tile + out tile
                  + 2 * (H * D + D + D * C + C) * 4      # wp, bp, wc, bc
                  + tn * H * 4)                          # pool_acc scratch
    vmem_limit = int(min(vmem_cap, max(need_bytes + (16 << 20), 32 << 20)))

    kernel = functools.partial(goodluck_kernel,
                               seq_len=L, tile_l=tl, mask_l=mask_l)

    return pl.pallas_call(
        kernel,
        out_shape=jax.ShapeDtypeStruct((N, C), jnp.float32),
        grid_spec=pltpu.PrefetchScalarGridSpec(
            num_scalar_prefetch=0,
            grid=grid,
            in_specs=[
                pl.BlockSpec((tn, tl, H), lambda i, l: (i, l, 0)),   # conv_emb (bf16)
                pl.BlockSpec((H, D),      lambda i, l: (0, 0)),      # wp (resident)
                pl.BlockSpec((1, D),      lambda i, l: (0, 0)),      # bp
                pl.BlockSpec((tn, D),     lambda i, l: (i, 0)),      # pe rows
                pl.BlockSpec((D, C),      lambda i, l: (0, 0)),      # wc
                pl.BlockSpec((1, C),      lambda i, l: (0, 0)),      # bc
            ],
            out_specs=pl.BlockSpec((tn, C), lambda i, l: (i, 0)),
            scratch_shapes=[pltpu.VMEM((tn, H), jnp.float32)],
        ),
        compiler_params=pltpu.CompilerParams(
            dimension_semantics=("parallel", "arbitrary"),
            vmem_limit_bytes=vmem_limit,
        ),
    )(conv_emb, params["wp"], params["bp"], params["pe"],
      params["wc"], params["bc"])


# ----------------------------------------------------------------------------
# Params / reference
# ----------------------------------------------------------------------------
def sinusoidal_pe(max_len, d_model):
    pos = jnp.arange(max_len, dtype=jnp.float32)[:, None]
    i = jnp.arange(0, d_model, 2, dtype=jnp.float32)
    div = jnp.exp(-jnp.log(10000.0) * i / d_model)
    pe = jnp.zeros((max_len, d_model), jnp.float32)
    pe = pe.at[:, 0::2].set(jnp.sin(pos * div))
    pe = pe.at[:, 1::2].set(jnp.cos(pos * div))
    return pe


def xavier_uniform(key, shape, fan_in, fan_out):
    limit = (6.0 / (fan_in + fan_out)) ** 0.5
    return jax.random.uniform(key, shape, jnp.float32, -limit, limit)


def init_params(key, hidden=768, emb_dim=32, num_class=8, max_len=64):
    k1, k2, k3 = jax.random.split(key, 3)
    return {
        "wp": xavier_uniform(k1, (hidden, emb_dim), hidden, emb_dim),  # proj
        "bp": jnp.zeros((1, emb_dim), jnp.float32),
        "wf": xavier_uniform(k2, (1, emb_dim), emb_dim, 1),            # fusion (no-op at num_layer=0)
        "wc": xavier_uniform(k3, (emb_dim, num_class), emb_dim, num_class),
        "bc": jnp.zeros((1, num_class), jnp.float32),
        "pe": sinusoidal_pe(max_len, emb_dim),
    }


def reference_forward(conv_emb, params):
    """Pure-JAX reference of the same forward pass (generic fusion path)."""
    N = conv_emb.shape[0]
    pooled = jnp.max(conv_emb, axis=1)
    src = pooled @ params["wp"] + params["bp"] + params["pe"][:N]
    feat = jnp.stack([src] * NUM_BLOCK, axis=0)               # (K, N, D)
    al = jnp.einsum("knd,d->kn", feat, params["wf"][0])
    alpha = jax.nn.softmax(al, axis=0)
    fused = jnp.einsum("kn,knd->nd", alpha, feat)
    logits = fused @ params["wc"] + params["bc"]
    return jax.nn.log_softmax(logits, axis=-1)


if __name__ == "__main__":
    # Small deterministic shapes:
    #   N = 8 utterances (src_len), L = 16 tokens each, BERT hidden = 768,
    #   emb_dim = 32, num_class = 8, num_block = 3, num_layer = 0.
    key = jax.random.PRNGKey(0)
    k_emb, k_par = jax.random.split(key)

    N, L, H, D, C = 8, 16, 768, 32, 8
    # Stand-in for BERT output; produced directly in bf16 (half the HBM bytes).
    conv_emb = jax.random.normal(k_emb, (N, L, H), jnp.float32).astype(jnp.bfloat16)
    params = init_params(k_par, hidden=H, emb_dim=D, num_class=C, max_len=64)

    log_prob = goodluck_forward(conv_emb, params)
    jax.block_until_ready(log_prob)

    ref = reference_forward(conv_emb, params)
    assert log_prob.shape == (N, C)
    assert jnp.allclose(log_prob, ref, atol=1e-4, rtol=1e-3), "mismatch vs reference"

    print("KERNEL_OK")
</pallas_src>

<mosaic_0001>
module attributes {stable_mosaic.version = 11 : i64} {
  func.func @goodluck_kernel(%arg0: i32, %arg1: i32, %arg2: memref<8x16x768xbf16, #tpu.memory_space<vmem>>, %arg3: memref<768x32xf32, #tpu.memory_space<vmem>>, %arg4: memref<1x32xf32, #tpu.memory_space<vmem>>, %arg5: memref<8x32xf32, #tpu.memory_space<vmem>>, %arg6: memref<32x8xf32, #tpu.memory_space<vmem>>, %arg7: memref<1x8xf32, #tpu.memory_space<vmem>>, %arg8: memref<8x8xf32, #tpu.memory_space<vmem>>, %arg9: memref<8x768xf32, #tpu.memory_space<vmem>>) attributes {dimension_semantics = [#tpu.dimension_semantics<parallel>, #tpu.dimension_semantics<arbitrary>], iteration_bounds = array<i64: 1, 1>, scalar_prefetch = 0 : i64, scratch_operands = 1 : i64, tpu.core_type = #tpu.core_type<tc>, window_params = [{transform_indices = @transform_0, window_bounds = array<i64: 8, 16, 768>}, {pipeline_mode = #tpu.pipeline_mode<synchronous>, transform_indices = @transform_1, window_bounds = array<i64: 768, 32>}, {pipeline_mode = #tpu.pipeline_mode<synchronous>, transform_indices = @transform_2, window_bounds = array<i64: 1, 32>}, {transform_indices = @transform_3, window_bounds = array<i64: 8, 32>}, {pipeline_mode = #tpu.pipeline_mode<synchronous>, transform_indices = @transform_4, window_bounds = array<i64: 32, 8>}, {pipeline_mode = #tpu.pipeline_mode<synchronous>, transform_indices = @transform_5, window_bounds = array<i64: 1, 8>}, {transform_indices = @transform_6, window_bounds = array<i64: 8, 8>}]} {
    %c0_i32 = arith.constant 0 : i32
    %0 = arith.cmpi eq, %arg1, %c0_i32 : i32
    %1 = arith.extui %0 : i1 to i32
    %c0_i32_0 = arith.constant 0 : i32
    %2 = arith.cmpi ne, %1, %c0_i32_0 : i32
    scf.if %2 {
      %cst_9 = arith.constant 0xFF800000 : f32
      %12 = vector.broadcast %cst_9 : f32 to vector<8x768xf32>
      %c0_10 = arith.constant 0 : index
      %c0_11 = arith.constant 0 : index
      %13 = vector.load %arg9[%c0_10, %c0_11] : memref<8x768xf32, #tpu.memory_space<vmem>>, vector<8x768xf32>
      tpu.vector_store %arg9[%c0_10, %c0_11], %12 {strides = array<i32>} : memref<8x768xf32, #tpu.memory_space<vmem>>, vector<8x768xf32>,
    } else {
    }
    %c0 = arith.constant 0 : index
    %c0_1 = arith.constant 0 : index
    %c0_2 = arith.constant 0 : index
    %3 = vector.load %arg2[%c0, %c0_1, %c0_2] : memref<8x16x768xbf16, #tpu.memory_space<vmem>>, vector<8x16x768xbf16>
    %4 = arith.extf %3 : vector<8x16x768xbf16> to vector<8x16x768xf32>
    %c0_3 = arith.constant 0 : index
    %c0_4 = arith.constant 0 : index
    %5 = vector.load %arg9[%c0_3, %c0_4] : memref<8x768xf32, #tpu.memory_space<vmem>>, vector<8x768xf32>
    %cst = arith.constant dense<0xFF800000> : vector<8x768xf32>
    %6 = vector.multi_reduction <maximumf>, %4, %cst [1] : vector<8x16x768xf32> to vector<8x768xf32>
    %7 = arith.maximumf %5, %6 : vector<8x768xf32>
    %c0_5 = arith.constant 0 : index
    %c0_6 = arith.constant 0 : index
    %8 = vector.load %arg9[%c0_5, %c0_6] : memref<8x768xf32, #tpu.memory_space<vmem>>, vector<8x768xf32>
    tpu.vector_store %arg9[%c0_5, %c0_6], %7 {strides = array<i32>} : memref<8x768xf32, #tpu.memory_space<vmem>>, vector<8x768xf32>,
    %c0_i32_7 = arith.constant 0 : i32
    %9 = arith.cmpi eq, %arg1, %c0_i32_7 : i32
    %10 = arith.extui %9 : i1 to i32
    %c0_i32_8 = arith.constant 0 : i32
    %11 = arith.cmpi ne, %10, %c0_i32_8 : i32
    scf.if %11 {
      %c0_9 = arith.constant 0 : index
      %c0_10 = arith.constant 0 : index
      %12 = vector.load %arg9[%c0_9, %c0_10] : memref<8x768xf32, #tpu.memory_space<vmem>>, vector<8x768xf32>
      %c0_11 = arith.constant 0 : index
      %c0_12 = arith.constant 0 : index
      %13 = vector.load %arg3[%c0_11, %c0_12] : memref<768x32xf32, #tpu.memory_space<vmem>>, vector<768x32xf32>
      %cst_13 = arith.constant dense<0.000000e+00> : vector<8x32xf32>
      %14 = tpu.matmul %12, %13, %cst_13 {dimension_numbers = #tpu.dot_dimension_numbers<[1], [0], [0], [1], [0, 0, 1, 1], [], []>} : vector<8x768xf32>, vector<768x32xf32>, vector<8x32xf32> -> vector<8x32xf32>
      %c0_14 = arith.constant 0 : index
      %c0_15 = arith.constant 0 : index
      %15 = vector.load %arg4[%c0_14, %c0_15] : memref<1x32xf32, #tpu.memory_space<vmem>>, vector<1x32xf32>
      %16 = vector.broadcast %15 : vector<1x32xf32> to vector<8x32xf32>
      %17 = arith.addf %14, %16 : vector<8x32xf32>
      %c0_16 = arith.constant 0 : index
      %c0_17 = arith.constant 0 : index
      %18 = vector.load %arg5[%c0_16, %c0_17] : memref<8x32xf32, #tpu.memory_space<vmem>>, vector<8x32xf32>
      %19 = arith.addf %17, %18 : vector<8x32xf32>
      %c0_18 = arith.constant 0 : index
      %c0_19 = arith.constant 0 : index
      %20 = vector.load %arg6[%c0_18, %c0_19] : memref<32x8xf32, #tpu.memory_space<vmem>>, vector<32x8xf32>
      %cst_20 = arith.constant dense<0.000000e+00> : vector<8x8xf32>
      %21 = tpu.matmul %19, %20, %cst_20 {dimension_numbers = #tpu.dot_dimension_numbers<[1], [0], [0], [1], [0, 0, 1, 1], [], []>} : vector<8x32xf32>, vector<32x8xf32>, vector<8x8xf32> -> vector<8x8xf32>
      %c0_21 = arith.constant 0 : index
      %c0_22 = arith.constant 0 : index
      %22 = vector.load %arg7[%c0_21, %c0_22] : memref<1x8xf32, #tpu.memory_space<vmem>>, vector<1x8xf32>
      %23 = vector.broadcast %22 : vector<1x8xf32> to vector<8x8xf32>
      %24 = arith.addf %21, %23 : vector<8x8xf32>
      %cst_23 = arith.constant dense<0xFF800000> : vector<8xf32>
      %25 = vector.multi_reduction <maximumf>, %24, %cst_23 [1] : vector<8x8xf32> to vector<8xf32>
      %26 = vector.shape_cast %25 : vector<8xf32> to vector<8x1xf32>
      %27 = vector.broadcast %26 : vector<8x1xf32> to vector<8x8xf32>
      %28 = arith.subf %24, %27 : vector<8x8xf32>
      %29 = math.exp %28 : vector<8x8xf32>
      %cst_24 = arith.constant dense<0.000000e+00> : vector<8xf32>
      %30 = vector.multi_reduction <add>, %29, %cst_24 [1] : vector<8x8xf32> to vector<8xf32>
      %31 = vector.shape_cast %30 : vector<8xf32> to vector<8x1xf32>
      %32 = math.log %31 : vector<8x1xf32>
      %33 = arith.addf %32, %26 : vector<8x1xf32>
      %34 = vector.broadcast %33 : vector<8x1xf32> to vector<8x8xf32>
      %35 = arith.subf %24, %34 : vector<8x8xf32>
      %c0_25 = arith.constant 0 : index
      %c0_26 = arith.constant 0 : index
      %36 = vector.load %arg8[%c0_25, %c0_26] : memref<8x8xf32, #tpu.memory_space<vmem>>, vector<8x8xf32>
      tpu.vector_store %arg8[%c0_25, %c0_26], %35 {strides = array<i32>} : memref<8x8xf32, #tpu.memory_space<vmem>>, vector<8x8xf32>,
    } else {
    }
    return
  }
  func.func @transform_0(%arg0: i32, %arg1: i32) -> (i32, i32, i32) {
    %c0_i32 = arith.constant 0 : i32
    %c0_i32_0 = arith.constant 0 : i32
    return %arg0, %arg1, %c0_i32 : i32, i32, i32
  }
  func.func @transform_1(%arg0: i32, %arg1: i32) -> (i32, i32) {
    %c0_i32 = arith.constant 0 : i32
    %c0_i32_0 = arith.constant 0 : i32
    %c0_i32_1 = arith.constant 0 : i32
    return %c0_i32, %c0_i32_0 : i32, i32
  }
  func.func @transform_2(%arg0: i32, %arg1: i32) -> (i32, i32) {
    %c0_i32 = arith.constant 0 : i32
    %c0_i32_0 = arith.constant 0 : i32
    %c0_i32_1 = arith.constant 0 : i32
    return %c0_i32, %c0_i32_0 : i32, i32
  }
  func.func @transform_3(%arg0: i32, %arg1: i32) -> (i32, i32) {
    %c0_i32 = arith.constant 0 : i32
    %c0_i32_0 = arith.constant 0 : i32
    return %arg0, %c0_i32 : i32, i32
  }
  func.func @transform_4(%arg0: i32, %arg1: i32) -> (i32, i32) {
    %c0_i32 = arith.constant 0 : i32
    %c0_i32_0 = arith.constant 0 : i32
    %c0_i32_1 = arith.constant 0 : i32
    return %c0_i32, %c0_i32_0 : i32, i32
  }
  func.func @transform_5(%arg0: i32, %arg1: i32) -> (i32, i32) {
    %c0_i32 = arith.constant 0 : i32
    %c0_i32_0 = arith.constant 0 : i32
    %c0_i32_1 = arith.constant 0 : i32
    return %c0_i32, %c0_i32_0 : i32, i32
  }
  func.func @transform_6(%arg0: i32, %arg1: i32) -> (i32, i32) {
    %c0_i32 = arith.constant 0 : i32
    %c0_i32_0 = arith.constant 0 : i32
    return %arg0, %c0_i32 : i32, i32
  }
}

</mosaic_0001>

<bundles_post_ra>
// kernel: goodluck_forward.1
= control target key start
LH: loop header
LB: loop body
LE: loop exit
PB: predicated region body
PF: predicated region fallthrough
CT: control target
= control target key end

     0   :  { %vm568_vm0 = vcmask 1041409   ;;  %vm570_vm1 = vcmask 1042434   ;;  %vm572_vm2 = vcmask 1043459   ;;  %vm574_vm3 = vcmask 1044484   ;;  %s1965_s0 = inlined_call_operand.vmem [shape: bf16[8,16,768], index: 0, kind: input, shape index: {}]   ;;  %s1966_s1 = inlined_call_operand.vmem [shape: f32[768,32], index: 1, kind: input, shape index: {}]   ;;  %s1967_s2 = inlined_call_operand.vmem [shape: f32[1,32], index: 2, kind: input, shape index: {}]   ;;  %s1968_s3 = inlined_call_operand.vmem [shape: f32[64,32], index: 3, kind: input, shape index: {}]   ;;  %s1969_s4 = inlined_call_operand.vmem [shape: f32[32,8], index: 4, kind: input, shape index: {}]   ;;  %s1970_s5 = inlined_call_operand.vmem [shape: f32[1,8], index: 5, kind: input, shape index: {}]   ;;  %s1971_s6 = inlined_call_operand.hbm [shape: f32[8,8], index: 6, kind: output, shape index: {}]  }
   0x1   :  { %v675_v0 = vld [vmem:[%s1966_s1 + $0xf8] sm:$0xff]  ;;  %v674_v2 = vld [vmem:[%s1966_s1 + $0xf0] sm:$0xff]  ;;  %v673_v6 = vld [vmem:[%s1966_s1 + $0xe8] sm:$0xff]  ;;  %vm576_vm4 = vcmask 1045509   ;;  %vm578_vm5 = vcmask 1046534   ;;  %vm580_vm6 = vcmask 1047559  }
   0x2   :  { %v659_v1 = vld [vmem:[%s1966_s1 + $0x78] sm:$0xff]  ;;  %1076 = vmatprep.subr.mxu0 %v675_v0  ;;  %v658_v4 = vld [vmem:[%s1966_s1 + $0x70] sm:$0xff]  ;;  %v657_v8 = vld [vmem:[%s1966_s1 + $0x68] sm:$0xff] }
   0x3   :  { %v707_v3 = vld [vmem:[%s1966_s1 + $0x1f8] sm:$0xff]  ;;  %1077 = vmatpush3.msra.mxu0 %v659_v1  ;;  %v706_v7 = vld [vmem:[%s1966_s1 + $0x1f0] sm:$0xff]  ;;  %v705_v10 = vld [vmem:[%s1966_s1 + $0x1e8] sm:$0xff] }
   0x4   :  { %v691_v5 = vld [vmem:[%s1966_s1 + $0x178] sm:$0xff]  ;;  %1111 = vmatprep.subr.mxu1 %v707_v3  ;;  %1078 = vmatprep.subr.mxu0 %v674_v2  ;;  %v690_v9 = vld [vmem:[%s1966_s1 + $0x170] sm:$0xff]  ;;  %v672_v11 = vld [vmem:[%s1966_s1 + $0xe0] sm:$0xff] }
   0x5   :  { %1112 = vmatpush3.msra.mxu1 %v691_v5  ;;  %1079 = vmatpush3.msra.mxu0 %v658_v4  ;;  %v689_v12 = vld [vmem:[%s1966_s1 + $0x168] sm:$0xff]  ;;  %v656_v13 = vld [vmem:[%s1966_s1 + $0x60] sm:$0xff]  ;;  %v671_v15 = vld [vmem:[%s1966_s1 + $0xd8] sm:$0xff] }
   0x6   :  { %1113 = vmatprep.subr.mxu1 %v706_v7  ;;  %1080 = vmatprep.subr.mxu0 %v673_v6  ;;  %v704_v14 = vld [vmem:[%s1966_s1 + $0x1e0] sm:$0xff]  ;;  %v655_v17 = vld [vmem:[%s1966_s1 + $0x58] sm:$0xff]  ;;  %v670_v19 = vld [vmem:[%s1966_s1 + $0xd0] sm:$0xff] }
   0x7   :  { %1114 = vmatpush3.msra.mxu1 %v690_v9  ;;  %1081 = vmatpush3.msra.mxu0 %v657_v8  ;;  %v688_v16 = vld [vmem:[%s1966_s1 + $0x160] sm:$0xff]  ;;  %v703_v18 = vld [vmem:[%s1966_s1 + $0x1d8] sm:$0xff]  ;;  %v654_v21 = vld [vmem:[%s1966_s1 + $0x50] sm:$0xff] }
   0x8   :  { %1115 = vmatprep.subr.mxu1 %v705_v10  ;;  %1082 = vmatprep.subr.mxu0 %v672_v11  ;;  %v687_v20 = vld [vmem:[%s1966_s1 + $0x158] sm:$0xff]  ;;  %v702_v22 = vld [vmem:[%s1966_s1 + $0x1d0] sm:$0xff]  ;;  %v669_v23 = vld [vmem:[%s1966_s1 + $0xc8] sm:$0xff] }
   0x9   :  { %1116 = vmatpush3.msra.mxu1 %v689_v12  ;;  %1083 = vmatpush3.msra.mxu0 %v656_v13  ;;  %v686_v24 = vld [vmem:[%s1966_s1 + $0x150] sm:$0xff]  ;;  %v653_v25 = vld [vmem:[%s1966_s1 + $0x48] sm:$0xff]  ;;  %v668_v27 = vld [vmem:[%s1966_s1 + $0xc0] sm:$0xff] }
   0xa   :  { %1117 = vmatprep.subr.mxu1 %v704_v14  ;;  %1084 = vmatprep.subr.mxu0 %v671_v15  ;;  %v701_v26 = vld [vmem:[%s1966_s1 + $0x1c8] sm:$0xff]  ;;  %v652_v29 = vld [vmem:[%s1966_s1 + $0x40] sm:$0xff]  ;;  %v667_v31 = vld [vmem:[%s1966_s1 + $0xb8] sm:$0xff] }
   0xb   :  { %1118 = vmatpush3.msra.mxu1 %v688_v16  ;;  %1085 = vmatpush3.msra.mxu0 %v655_v17  ;;  %v685_v28 = vld [vmem:[%s1966_s1 + $0x148] sm:$0xff]  ;;  %v700_v30 = vld [vmem:[%s1966_s1 + $0x1c0] sm:$0xff]  ;;  %v651_v33 = vld [vmem:[%s1966_s1 + $0x38] sm:$0xff] }
   0xc   :  { %1119 = vmatprep.subr.mxu1 %v703_v18  ;;  %1086 = vmatprep.subr.mxu0 %v670_v19  ;;  %v684_v32 = vld [vmem:[%s1966_s1 + $0x140] sm:$0xff]  ;;  %v699_v34 = vld [vmem:[%s1966_s1 + $0x1b8] sm:$0xff]  ;;  %v666_v35 = vld [vmem:[%s1966_s1 + $0xb0] sm:$0xff] }
   0xd   :  { %1120 = vmatpush3.msra.mxu1 %v687_v20  ;;  %1087 = vmatpush3.msra.mxu0 %v654_v21  ;;  %v650_v36 = vld [vmem:[%s1966_s1 + $0x30] sm:$0xff]  ;;  %v683_v37 = vld [vmem:[%s1966_s1 + $0x138] sm:$0xff]  ;;  %v665_v38 = vld [vmem:[%s1966_s1 + $0xa8] sm:$0xff] }
   0xe   :  { %1121 = vmatprep.subr.mxu1 %v702_v22  ;;  %1088 = vmatprep.subr.mxu0 %v669_v23  ;;  %v698_v39 = vld [vmem:[%s1966_s1 + $0x1b0] sm:$0xff]  ;;  %v649_v40 = vld [vmem:[%s1966_s1 + $0x28] sm:$0xff]  ;;  %v664_v42 = vld [vmem:[%s1966_s1 + $0xa0] sm:$0xff] }
   0xf   :  { %1122 = vmatpush3.msra.mxu1 %v686_v24  ;;  %1089 = vmatpush3.msra.mxu0 %v653_v25  ;;  %v682_v41 = vld [vmem:[%s1966_s1 + $0x130] sm:$0xff]  ;;  %v697_v43 = vld [vmem:[%s1966_s1 + $0x1a8] sm:$0xff]  ;;  %v648_v44 = vld [vmem:[%s1966_s1 + $0x20] sm:$0xff] }
  0x10   :  { %1123 = vmatprep.subr.mxu1 %v701_v26  ;;  %1090 = vmatprep.subr.mxu0 %v668_v27  ;;  %v681_v45 = vld [vmem:[%s1966_s1 + $0x128] sm:$0xff]  ;;  %v696_v46 = vld [vmem:[%s1966_s1 + $0x1a0] sm:$0xff]  ;;  %v663_v47 = vld [vmem:[%s1966_s1 + $0x98] sm:$0xff] }
  0x11   :  { %1124 = vmatpush3.msra.mxu1 %v685_v28  ;;  %1091 = vmatpush3.msra.mxu0 %v652_v29  ;;  %v680_v48 = vld [vmem:[%s1966_s1 + $0x120] sm:$0xff]  ;;  %v1419_v50 = vld [vmem:[%s1965_s0 + $0x18] sm:$0xff]  ;;  %v1430_v53 = vld [vmem:[%s1965_s0 + $0x30] sm:$0xff] }
  0x12   :  { %1125 = vmatprep.subr.mxu1 %v700_v30  ;;  %1092 = vmatprep.subr.mxu0 %v667_v31  ;;  %v1414_v49 = vld [vmem:[%s1965_s0] sm:$0xff]  ;;  %v647_v51 = vld [vmem:[%s1966_s1 + $0x18] sm:$0xff]  ;;  %v1435_v54 = vld [vmem:[%s1965_s0 + $0x48] sm:$0xff]  ;;  %v89_v57 = vunpack.c.h.bf16 %v1419_v50  ;;  %v88_v59 = vunpack.c.l.bf16 %v1419_v50  ;;  %v95_v1 = vunpack.c.h.bf16 %v1430_v53  ;;  %v94_v4 = vunpack.c.l.bf16 %v1430_v53 }
  0x13   :  { %1126 = vmatpush3.msra.mxu1 %v684_v32  ;;  %1093 = vmatpush3.msra.mxu0 %v651_v33  ;;  %v695_v52 = vld [vmem:[%s1966_s1 + $0x198] sm:$0xff]  ;;  %v1440_v55 = vld [vmem:[%s1965_s0 + $0x60] sm:$0xff]  ;;  %v83_v56 = vunpack.c.h.bf16 %v1414_v49  ;;  %v82_v58 = vunpack.c.l.bf16 %v1414_v49  ;;  %v662_v60 = vld [vmem:[%s1966_s1 + $0x90] sm:$0xff]  ;;  %v101_v2 = vunpack.c.h.bf16 %v1435_v54 }
  0x14   :  { %1127 = vmatprep.subr.mxu1 %v699_v34  ;;  %1094 = vmatprep.subr.mxu0 %v666_v35  ;;  %v679_v61 = vld [vmem:[%s1966_s1 + $0x118] sm:$0xff]  ;;  %v1460_v63 = vld [vmem:[%s1965_s0 + $0x90] sm:$0xff]  ;;  %v1465_v0 = vld [vmem:[%s1965_s0 + $0xa8] sm:$0xff]  ;;  %v107_v3 = vunpack.c.h.bf16 %v1440_v55 }
  0x15   :  { %1128 = vmatpush3.msra.mxu1 %v683_v37  ;;  %1095 = vmatpush3.msra.mxu0 %v650_v36  ;;  %v1455_v62 = vld [vmem:[%s1965_s0 + $0x78] sm:$0xff]  ;;  %v646_v5 = vld [vmem:[%s1966_s1 + $0x10] sm:$0xff]  ;;  %v1477_v6 = vld [vmem:[%s1965_s0 + $0xc0] sm:$0xff]  ;;  %v119_v10 = vunpack.c.h.bf16 %v1460_v63  ;;  %v125_v11 = vunpack.c.h.bf16 %v1465_v0  ;;  %v191_v12 = vmax.f32 %v83_v56, %v89_v57  ;;  %v233_v19 = vmax.f32 %v95_v1, %v101_v2 }
  0x16   :  { %1129 = vmatprep.subr.mxu1 %v698_v39  ;;  %1096 = vmatprep.subr.mxu0 %v665_v38  ;;  %v1482_v7 = vld [vmem:[%s1965_s0 + $0xd8] sm:$0xff]  ;;  %v1487_v8 = vld [vmem:[%s1965_s0 + $0xf0] sm:$0xff]  ;;  %v113_v9 = vunpack.c.h.bf16 %v1455_v62  ;;  %v1495_v13 = vld [vmem:[%s1965_s0 + $0x108] sm:$0xff]  ;;  %v131_v16 = vunpack.c.h.bf16 %v1477_v6  ;;  %v100_v38 = vunpack.c.l.bf16 %v1435_v54 }
  0x17   :  { %1130 = vmatpush3.msra.mxu1 %v682_v41  ;;  %1097 = vmatpush3.msra.mxu0 %v649_v40  ;;  %v1500_v14 = vld [vmem:[%s1965_s0 + $0x120] sm:$0xff]  ;;  %v1505_v15 = vld [vmem:[%s1965_s0 + $0x138] sm:$0xff]  ;;  %v137_v17 = vunpack.c.h.bf16 %v1482_v7  ;;  %v143_v18 = vunpack.c.h.bf16 %v1487_v8  ;;  %v694_v20 = vld [vmem:[%s1966_s1 + $0x190] sm:$0xff]  ;;  %v149_v23 = vunpack.c.h.bf16 %v1495_v13  ;;  %v192_v26 = vrot.slane %v191_v12, 4 }
  0x18   :  { %1131 = vmatprep.subr.mxu1 %v697_v43  ;;  %1098 = vmatprep.subr.mxu0 %v664_v42  ;;  %v1516_v21 = vld [vmem:[%s1965_s0 + $0x150] sm:$0xff]  ;;  %v1521_v22 = vld [vmem:[%s1965_s0 + $0x168] sm:$0xff]  ;;  %v155_v24 = vunpack.c.h.bf16 %v1500_v14  ;;  %v161_v25 = vunpack.c.h.bf16 %v1505_v15  ;;  %v234_v31 = vrot.slane %v233_v19, 4  ;;  %v275_v32 = vmax.f32 %v107_v3, %v113_v9  ;;  %v660_v39 = vld [vmem:[%s1966_s1 + $0x80] sm:$0xff] }
  0x19   :  { %1132 = vmatpush3.msra.mxu1 %v681_v45  ;;  %1099 = vmatpush3.msra.mxu0 %v648_v44  ;;  %v661_v27 = vld [vmem:[%s1966_s1 + $0x88] sm:$0xff]  ;;  %v678_v28 = vld [vmem:[%s1966_s1 + $0x110] sm:$0xff]  ;;  %v167_v29 = vunpack.c.h.bf16 %v1516_v21  ;;  %v173_v30 = vunpack.c.h.bf16 %v1521_v22  ;;  %v193_v35 = vmax.f32 %v191_v12, %v192_v26  ;;  %v317_v36 = vmax.f32 %v119_v10, %v125_v11  ;;  %v644_v45 = vld [vmem:[%s1966_s1] sm:$0xff] }
  0x1a   :  { %1133 = vmatprep.subr.mxu1 %v696_v46  ;;  %1100 = vmatprep.subr.mxu0 %v663_v47  ;;  %v645_v33 = vld [vmem:[%s1966_s1 + $0x8] sm:$0xff]  ;;  %v359_v37 = vmax.f32 %v131_v16, %v137_v17  ;;  %v235_v40 = vmax.f32 %v233_v19, %v234_v31  ;;  %v276_v41 = vrot.slane %v275_v32, 4  ;;  %v401_v42 = vmax.f32 %v143_v18, %v149_v23  ;;  %v739_v1 = vld [vmem:[%s1966_s1 + $0x2f8] sm:$0xff]  ;;  %v676_v2 = vld [vmem:[%s1966_s1 + $0x100] sm:$0xff] }
  0x1b   :  { %1134 = vmatpush3.msra.mxu1 %v680_v48  ;;  %1101 = vmatpush3.msra.mxu0 %v647_v51  ;;  %v693_v34 = vld [vmem:[%s1966_s1 + $0x188] sm:$0xff]  ;;  %v443_v43 = vmax.f32 %v155_v24, %v161_v25  ;;  %v194_v46 = vrot.slane %v193_v35, 2  ;;  %v318_v47 = vrot.slane %v317_v36, 4  ;;  %v485_v51 = vmax.f32 %v167_v29, %v173_v30 }
  0x1c   :  { %1135 = vmatprep.subr.mxu1 %v695_v52  ;;  %1102 = vmatprep.subr.mxu0 %v662_v60  ;;  %v677_v44 = vld [vmem:[%s1966_s1 + $0x108] sm:$0xff]  ;;  %v360_v48 = vrot.slane %v359_v37, 4  ;;  %v692_v52 = vld [vmem:[%s1966_s1 + $0x180] sm:$0xff]  ;;  %v236_v56 = vrot.slane %v235_v40, 2  ;;  %v277_v57 = vmax.f32 %v275_v32, %v276_v41  ;;  %v402_v60 = vrot.slane %v401_v42, 4 }
  0x1d   :  { %1136 = vmatpush3.msra.mxu1 %v679_v61  ;;  %1103 = vmatpush3.msra.mxu0 %v646_v5  ;;  %v444_v61 = vrot.slane %v443_v43, 4  ;;  %v195_v3 = vmax.f32 %v193_v35, %v194_v46  ;;  %v319_v5 = vmax.f32 %v317_v36, %v318_v47  ;;  %v486_v10 = vrot.slane %v485_v51, 4 }
  0x1e   :  { %1137 = vmatprep.subr.mxu1 %v694_v20  ;;  %1104 = vmatprep.subr.mxu0 %v661_v27  ;;  %v361_v9 = vmax.f32 %v359_v37, %v360_v48  ;;  %v237_v11 = vmax.f32 %v235_v40, %v236_v56  ;;  %v278_v12 = vrot.slane %v277_v57, 2  ;;  %v403_v16 = vmax.f32 %v401_v42, %v402_v60 }
  0x1f   :  { %1138 = vmatpush3.msra.mxu1 %v678_v28  ;;  %1105 = vmatpush3.msra.mxu0 %v645_v33  ;;  %v445_v17 = vmax.f32 %v443_v43, %v444_v61  ;;  %v196_v18 = vrot.slane %v195_v3, 1  ;;  %v320_v19 = vrot.slane %v319_v5, 2  ;;  %v487_v23 = vmax.f32 %v485_v51, %v486_v10 }
  0x20   :  { %1139 = vmatprep.subr.mxu1 %v693_v34  ;;  %1106 = vmatprep.subr.mxu0 %v660_v39  ;;  %v362_v20 = vrot.slane %v361_v9, 2  ;;  %v238_v24 = vrot.slane %v237_v11, 1  ;;  %v279_v25 = vmax.f32 %v277_v57, %v278_v12  ;;  %v404_v26 = vrot.slane %v403_v16, 2 }
  0x21   :  { %1140 = vmatpush3.msra.mxu1 %v677_v44  ;;  %1107 = vmatpush3.msra.mxu0 %v644_v45  ;;  %v446_v27 = vrot.slane %v445_v17, 2  ;;  %v197_v28 = vmax.f32 %v195_v3, %v196_v18  ;;  %v321_v29 = vmax.f32 %v319_v5, %v320_v19  ;;  %v488_v31 = vrot.slane %v487_v23, 2 }
  0x22   :  { %1141 = vmatprep.subr.mxu1 %v692_v52  ;;  %1146 = vmatprep.subr.mxu0 %v739_v1  ;;  %v363_v30 = vmax.f32 %v361_v9, %v362_v20  ;;  %v239_v32 = vmax.f32 %v237_v11, %v238_v24  ;;  %v280_v33 = vrot.slane %v279_v25, 1  ;;  %v405_v34 = vmax.f32 %v403_v16, %v404_v26 }
  0x23   :  { %1142 = vmatpush3.msra.mxu1 %v676_v2  ;;  %v447_v35 = vmax.f32 %v445_v17, %v446_v27  ;;  %v322_v36 = vrot.slane %v321_v29, 1  ;;  %v489_v39 = vmax.f32 %v487_v23, %v488_v31  ;;  %v106_v40 = vunpack.c.l.bf16 %v1440_v55 }
  0x24   :  { %v364_v37 = vrot.slane %v363_v30, 1  ;;  %v281_v41 = vmax.f32 %v279_v25, %v280_v33  ;;  %v406_v42 = vrot.slane %v405_v34, 1  ;;  %v582_v44 = vsel %vm568_vm0, %v239_v32, %v197_v28 }
  0x25   :  { %v448_v43 = vrot.slane %v447_v35, 1  ;;  %v323_v45 = vmax.f32 %v321_v29, %v322_v36  ;;  %v490_v47 = vrot.slane %v489_v39, 1  ;;  %v112_v48 = vunpack.c.l.bf16 %v1455_v62 }
  0x26   :  { %v365_v46 = vmax.f32 %v363_v30, %v364_v37  ;;  %v407_v51 = vmax.f32 %v405_v34, %v406_v42  ;;  %v583_v56 = vsel %vm570_vm1, %v281_v41, %v582_v44  ;;  %v118_v57 = vunpack.c.l.bf16 %v1460_v63 }
  0x27   :  { %v449_v52 = vmax.f32 %v447_v35, %v448_v43  ;;  %v491_v60 = vmax.f32 %v489_v39, %v490_v47  ;;  %v584_v61 = vsel %vm572_vm2, %v323_v45, %v583_v56  ;;  %v124_v55 = vunpack.c.l.bf16 %v1465_v0 }
  0x28   :  { %v130_v1 = vunpack.c.l.bf16 %v1477_v6  ;;  %v585_v2 = vsel %vm574_vm3, %v365_v46, %v584_v61  ;;  %v136_v3 = vunpack.c.l.bf16 %v1482_v7  ;;  %v142_v5 = vunpack.c.l.bf16 %v1487_v8 }
  0x29   :  { %v148_v62 = vunpack.c.l.bf16 %v1495_v13  ;;  %v586_v9 = vsel %vm576_vm4, %v407_v51, %v585_v2  ;;  %v154_v10 = vunpack.c.l.bf16 %v1500_v14  ;;  %v160_v63 = vunpack.c.l.bf16 %v1505_v15 }
  0x2a   :  { %v166_v11 = vunpack.c.l.bf16 %v1516_v21  ;;  %v587_v0 = vsel %vm578_vm5, %v449_v52, %v586_v9  ;;  %v172_v6 = vunpack.c.l.bf16 %v1521_v22  ;;  %v184_v7 = vmax.f32 %v82_v58, %v88_v59 }
  0x2b   :  { %v226_v8 = vmax.f32 %v94_v4, %v100_v38  ;;  %v588_v13 = vsel %vm580_vm6, %v491_v60, %v587_v0  ;;  %v268_v14 = vmax.f32 %v106_v40, %v112_v48  ;;  %v310_v15 = vmax.f32 %v118_v57, %v124_v55 }
  0x2c   :  { %v352_v12 = vmax.f32 %v130_v1, %v136_v3  ;;  %811 = vmatprep.mubr.f32.mxu0 %v588_v13  ;;  %v185_v21 = vrot.slane %v184_v7, 4  ;;  %v394_v17 = vmax.f32 %v142_v5, %v148_v62  ;;  %v436_v22 = vmax.f32 %v154_v10, %v160_v63 }
  0x2d   :  { %v227_v16 = vrot.slane %v226_v8, 4  ;;  %v269_v18 = vrot.slane %v268_v14, 4  ;;  %v311_v50 = vrot.slane %v310_v15, 4  ;;  %v478_v49 = vmax.f32 %v166_v11, %v172_v6 }
  0x2e   :  { %v353_v19 = vrot.slane %v352_v12, 4  ;;  %v186_v58 = vmax.f32 %v184_v7, %v185_v21  ;;  %v395_v54 = vrot.slane %v394_v17, 4  ;;  %v437_v20 = vrot.slane %v436_v22, 4 }
  0x2f   :  { %v228_v59 = vmax.f32 %v226_v8, %v227_v16 }
  0x30   :  { %11 = vsyncpa [#allocation4], 0  ;;  %v270_v53 = vmax.f32 %v268_v14, %v269_v18  ;;  %v312_v4 = vmax.f32 %v310_v15, %v311_v50  ;;  %v354_v38 = vmax.f32 %v352_v12, %v353_v19  ;;  %v479_v23 = vrot.slane %v478_v49, 4  ;;  %v1589_v51 = vld [vmem:[%s1965_s0 + $0x8] sm:$0xff]  ;;  %v1594_v61 = vld [vmem:[%s1965_s0 + $0x20] sm:$0xff] }
  0x31   :  { %v187_v24 = vrot.slane %v186_v58, 2  ;;  %v229_v25 = vrot.slane %v228_v59, 2  ;;  %v396_v26 = vmax.f32 %v394_v17, %v395_v54  ;;  %v438_v27 = vmax.f32 %v436_v22, %v437_v20  ;;  %v1599_v55 = vld [vmem:[%s1965_s0 + $0x38] sm:$0xff]  ;;  %v1604_v62 = vld [vmem:[%s1965_s0 + $0x50] sm:$0xff]  ;;  %v1609_v9 = vld [vmem:[%s1965_s0 + $0x68] sm:$0xff] }
  0x32   :  { %v271_v28 = vrot.slane %v270_v53, 2  ;;  %v313_v29 = vrot.slane %v312_v4, 2  ;;  %v355_v30 = vrot.slane %v354_v38, 2  ;;  %v480_v31 = vmax.f32 %v478_v49, %v479_v23  ;;  %v1614_v10 = vld [vmem:[%s1965_s0 + $0x80] sm:$0xff]  ;;  %v1620_v6 = vld [vmem:[%s1965_s0 + $0x98] sm:$0xff]  ;;  %v1625_v7 = vld [vmem:[%s1965_s0 + $0xb0] sm:$0xff] }
  0x33   :  { %v188_v32 = vmax.f32 %v186_v58, %v187_v24  ;;  %v230_v33 = vmax.f32 %v228_v59, %v229_v25  ;;  %v397_v34 = vrot.slane %v396_v26, 2  ;;  %v439_v35 = vrot.slane %v438_v27, 2  ;;  %v1630_v8 = vld [vmem:[%s1965_s0 + $0xc8] sm:$0xff]  ;;  %v1637_v12 = vld [vmem:[%s1965_s0 + $0xe0] sm:$0xff]  ;;  %v1642_v21 = vld [vmem:[%s1965_s0 + $0xf8] sm:$0xff] }
  0x34   :  { %v272_v36 = vmax.f32 %v270_v53, %v271_v28  ;;  %v314_v37 = vmax.f32 %v312_v4, %v313_v29  ;;  %v356_v39 = vmax.f32 %v354_v38, %v355_v30  ;;  %v481_v40 = vrot.slane %v480_v31, 2  ;;  %v1647_v16 = vld [vmem:[%s1965_s0 + $0x110] sm:$0xff]  ;;  %v1655_v50 = vld [vmem:[%s1965_s0 + $0x128] sm:$0xff]  ;;  %v1660_v19 = vld [vmem:[%s1965_s0 + $0x140] sm:$0xff] }
  0x35   :  { %v189_v41 = vrot.slane %v188_v32, 1  ;;  %v231_v42 = vrot.slane %v230_v33, 1  ;;  %v398_v43 = vmax.f32 %v396_v26, %v397_v34  ;;  %v440_v44 = vmax.f32 %v438_v27, %v439_v35  ;;  %v1665_v49 = vld [vmem:[%s1965_s0 + $0x158] sm:$0xff]  ;;  %v1674_v53 = vld [vmem:[%s1965_s0 + $0x170] sm:$0xff] }
  0x36   :  { %v273_v45 = vrot.slane %v272_v36, 1  ;;  %v315_v46 = vrot.slane %v314_v37, 1  ;;  %v357_v47 = vrot.slane %v356_v39, 1  ;;  %v482_v48 = vmax.f32 %v480_v31, %v481_v40 }
  0x37   :  { %v190_v52 = vmax.f32 %v188_v32, %v189_v41  ;;  %v232_v56 = vmax.f32 %v230_v33, %v231_v42  ;;  %v399_v57 = vrot.slane %v398_v43, 1  ;;  %v441_v60 = vrot.slane %v440_v44, 1  ;;  %v723_v32 = vld [vmem:[%s1966_s1 + $0x278] sm:$0xff] }
  0x38   :  { %v274_v1 = vmax.f32 %v272_v36, %v273_v45  ;;  %v316_v2 = vmax.f32 %v314_v37, %v315_v46  ;;  %v358_v3 = vmax.f32 %v356_v39, %v357_v47  ;;  %v483_v5 = vrot.slane %v482_v48, 1  ;;  %v738_v37 = vld [vmem:[%s1966_s1 + $0x2f0] sm:$0xff] }
  0x39   :  { %v400_v63 = vmax.f32 %v398_v43, %v399_v57  ;;  %v442_v11 = vmax.f32 %v440_v44, %v441_v60  ;;  %v569_v0 = vsel %vm568_vm0, %v232_v56, %v190_v52  ;;  %v85_v13 = vunpack.c.h.bf16 %v1589_v51  ;;  %v722_v43 = vld [vmem:[%s1966_s1 + $0x270] sm:$0xff] }
  0x3a   :  { %v484_v14 = vmax.f32 %v482_v48, %v483_v5  ;;  %v571_v15 = vsel %vm570_vm1, %v274_v1, %v569_v0  ;;  %v91_v17 = vunpack.c.h.bf16 %v1594_v61  ;;  %v97_v22 = vunpack.c.h.bf16 %v1599_v55  ;;  %v737_v48 = vld [vmem:[%s1966_s1 + $0x2e8] sm:$0xff] }
  0x3b   :  { %v573_v18 = vsel %vm572_vm2, %v316_v2, %v571_v15  ;;  %v103_v58 = vunpack.c.h.bf16 %v1604_v62  ;;  %v109_v59 = vunpack.c.h.bf16 %v1609_v9  ;;  %v115_v54 = vunpack.c.h.bf16 %v1614_v10  ;;  %v721_v1 = vld [vmem:[%s1966_s1 + $0x268] sm:$0xff] }
  0x3c   :  { %v575_v20 = vsel %vm574_vm3, %v358_v3, %v573_v18  ;;  %v121_v4 = vunpack.c.h.bf16 %v1620_v6  ;;  %v127_v38 = vunpack.c.h.bf16 %v1625_v7  ;;  %v133_v23 = vunpack.c.h.bf16 %v1630_v8 }
  0x3d   :  { %v577_v24 = vsel %vm576_vm4, %v400_v63, %v575_v20  ;;  %v139_v25 = vunpack.c.h.bf16 %v1637_v12  ;;  %v145_v26 = vunpack.c.h.bf16 %v1642_v21  ;;  %v151_v27 = vunpack.c.h.bf16 %v1647_v16 }
  0x3e   :  { %v579_v28 = vsel %vm578_vm5, %v442_v11, %v577_v24  ;;  %v157_v29 = vunpack.c.h.bf16 %v1655_v50  ;;  %v163_v30 = vunpack.c.h.bf16 %v1660_v19  ;;  %v169_v31 = vunpack.c.h.bf16 %v1665_v49  ;;  %v736_v11 = vld [vmem:[%s1966_s1 + $0x2e0] sm:$0xff]  ;;  %v719_v24 = vld [vmem:[%s1966_s1 + $0x258] sm:$0xff] }
  0x3f   :  { %v581_v33 = vsel %vm580_vm6, %v484_v14, %v579_v28  ;;  %v175_v34 = vunpack.c.h.bf16 %v1674_v53  ;;  %v205_v35 = vmax.f32 %v85_v13, %v91_v17  ;;  %v247_v36 = vmax.f32 %v97_v22, %v103_v58  ;;  %v720_v17 = vld [vmem:[%s1966_s1 + $0x260] sm:$0xff] }
  0x40   :  { %812 = vmatmul.mubr.f32.vlgmr.msra.gmra.mxu0 %v581_v33  ;;  %v289_v39 = vmax.f32 %v109_v59, %v115_v54  ;;  %v331_v40 = vmax.f32 %v121_v4, %v127_v38  ;;  %v373_v41 = vmax.f32 %v133_v23, %v139_v25  ;;  %v415_v42 = vmax.f32 %v145_v26, %v151_v27  ;;  %v735_v54 = vld [vmem:[%s1966_s1 + $0x2d8] sm:$0xff] }
  0x41   :  { %v206_v44 = vrot.slane %v205_v35, 4  ;;  %v248_v45 = vrot.slane %v247_v36, 4  ;;  %v457_v46 = vmax.f32 %v157_v29, %v163_v30  ;;  %v499_v47 = vmax.f32 %v169_v31, %v175_v34  ;;  %1147 = vmatpush3.msra.mxu0 %v723_v32  ;;  %v734_v29 = vld [vmem:[%s1966_s1 + $0x2d0] sm:$0xff] }
  0x42   :  { %v290_v52 = vrot.slane %v289_v39, 4  ;;  %v332_v56 = vrot.slane %v331_v40, 4  ;;  %v374_v57 = vrot.slane %v373_v41, 4  ;;  %v416_v60 = vrot.slane %v415_v42, 4  ;;  %1148 = vmatprep.subr.mxu0 %v738_v37  ;;  %v718_v34 = vld [vmem:[%s1966_s1 + $0x250] sm:$0xff] }
  0x43   :  { %v207_v2 = vmax.f32 %v205_v35, %v206_v44  ;;  %v249_v3 = vmax.f32 %v247_v36, %v248_v45  ;;  %v458_v5 = vrot.slane %v457_v46, 4  ;;  %v500_v63 = vrot.slane %v499_v47, 4  ;;  %1149 = vmatpush3.msra.mxu0 %v722_v43  ;;  %v717_v45 = vld [vmem:[%s1966_s1 + $0x248] sm:$0xff] }
  0x44   :  { %v291_v0 = vmax.f32 %v289_v39, %v290_v52  ;;  %v333_v13 = vmax.f32 %v331_v40, %v332_v56  ;;  %v375_v14 = vmax.f32 %v373_v41, %v374_v57  ;;  %v417_v15 = vmax.f32 %v415_v42, %v416_v60  ;;  %1150 = vmatprep.subr.mxu0 %v737_v48  ;;  %v733_v40 = vld [vmem:[%s1966_s1 + $0x2c8] sm:$0xff]  ;;  %v732_v56 = vld [vmem:[%s1966_s1 + $0x2c0] sm:$0xff] }
  0x45   :  { %v208_v22 = vrot.slane %v207_v2, 2  ;;  %v250_v18 = vrot.slane %v249_v3, 2  ;;  %v459_v58 = vmax.f32 %v457_v46, %v458_v5  ;;  %v501_v59 = vmax.f32 %v499_v47, %v500_v63  ;;  %1151 = vmatpush3.msra.mxu0 %v721_v1 }
  0x46   :  { %v292_v20 = vrot.slane %v291_v0, 2  ;;  %v334_v4 = vrot.slane %v333_v13, 2  ;;  %v376_v38 = vrot.slane %v375_v14, 2  ;;  %v418_v23 = vrot.slane %v417_v15, 2  ;;  %1152 = vmatprep.subr.mxu0 %v736_v11 }
  0x47   :  { %v209_v25 = vmax.f32 %v207_v2, %v208_v22  ;;  %v251_v26 = vmax.f32 %v249_v3, %v250_v18  ;;  %v460_v27 = vrot.slane %v459_v58, 2  ;;  %v502_v28 = vrot.slane %v501_v59, 2  ;;  %1153 = vmatpush3.msra.mxu0 %v720_v17  ;;  %v716_v3 = vld [vmem:[%s1966_s1 + $0x240] sm:$0xff]  ;;  %v715_v18 = vld [vmem:[%s1966_s1 + $0x238] sm:$0xff] }
  0x48   :  { %v293_v30 = vmax.f32 %v291_v0, %v292_v20  ;;  %v335_v31 = vmax.f32 %v333_v13, %v334_v4  ;;  %v377_v32 = vmax.f32 %v375_v14, %v376_v38  ;;  %v419_v33 = vmax.f32 %v417_v15, %v418_v23  ;;  %1154 = vmatprep.subr.mxu0 %v735_v54  ;;  %v731_v13 = vld [vmem:[%s1966_s1 + $0x2b8] sm:$0xff] }
  0x49   :  { %v210_v35 = vrot.slane %v209_v25, 1  ;;  %v252_v36 = vrot.slane %v251_v26, 1  ;;  %v461_v37 = vmax.f32 %v459_v58, %v460_v27  ;;  %v503_v39 = vmax.f32 %v501_v59, %v502_v28  ;;  %1155 = vmatpush3.msra.mxu0 %v719_v24 }
  0x4a   :  { %v294_v41 = vrot.slane %v293_v30, 1  ;;  %v336_v42 = vrot.slane %v335_v31, 1  ;;  %v378_v43 = vrot.slane %v377_v32, 1  ;;  %v420_v44 = vrot.slane %v419_v33, 1  ;;  %1156 = vmatprep.subr.mxu0 %v734_v29  ;;  %v728_v29 = vld [vmem:[%s1966_s1 + $0x2a0] sm:$0xff] }
  0x4b   :  { %v211_v46 = vmax.f32 %v209_v25, %v210_v35  ;;  %v253_v47 = vmax.f32 %v251_v26, %v252_v36  ;;  %v462_v48 = vrot.slane %v461_v37, 1  ;;  %v504_v52 = vrot.slane %v503_v39, 1  ;;  %1157 = vmatpush3.msra.mxu0 %v718_v34  ;;  %v729_v25 = vld [vmem:[%s1966_s1 + $0x2a8] sm:$0xff]  ;;  %v712_v34 = vld [vmem:[%s1966_s1 + $0x220] sm:$0xff] }
  0x4c   :  { %v295_v57 = vmax.f32 %v293_v30, %v294_v41  ;;  %v337_v60 = vmax.f32 %v335_v31, %v336_v42  ;;  %v379_v1 = vmax.f32 %v377_v32, %v378_v43  ;;  %v421_v2 = vmax.f32 %v419_v33, %v420_v44  ;;  %1158 = vmatprep.subr.mxu0 %v733_v40  ;;  %v727_v40 = vld [vmem:[%s1966_s1 + $0x298] sm:$0xff] }
  0x4d   :  { %v463_v5 = vmax.f32 %v461_v37, %v462_v48  ;;  %v505_v63 = vmax.f32 %v503_v39, %v504_v52  ;;  %v596_v11 = vsel %vm568_vm0, %v253_v47, %v211_v46  ;;  %v84_v0 = vunpack.c.l.bf16 %v1589_v51  ;;  %1159 = vmatpush3.msra.mxu0 %v717_v45  ;;  %v711_v45 = vld [vmem:[%s1966_s1 + $0x218] sm:$0xff] }
  0x4e   :  { %v597_v14 = vsel %vm570_vm1, %v295_v57, %v596_v11  ;;  %v90_v15 = vunpack.c.l.bf16 %v1594_v61  ;;  %v96_v17 = vunpack.c.l.bf16 %v1599_v55  ;;  %v102_v22 = vunpack.c.l.bf16 %v1604_v62  ;;  %1160 = vmatprep.subr.mxu0 %v732_v56  ;;  %v730_v61 = vld [vmem:[%s1966_s1 + $0x2b0] sm:$0xff] }
  0x4f   :  { %v598_v51 = vsel %vm572_vm2, %v337_v60, %v597_v14  ;;  %v108_v58 = vunpack.c.l.bf16 %v1609_v9  ;;  %v114_v59 = vunpack.c.l.bf16 %v1614_v10  ;;  %v120_v54 = vunpack.c.l.bf16 %v1620_v6  ;;  %1161 = vmatpush3.msra.mxu0 %v716_v3  ;;  %v714_v9 = vld [vmem:[%s1966_s1 + $0x230] sm:$0xff] }
  0x50   :  { %v599_v55 = vsel %vm574_vm3, %v379_v1, %v598_v51  ;;  %v126_v62 = vunpack.c.l.bf16 %v1625_v7  ;;  %v132_v20 = vunpack.c.l.bf16 %v1630_v8  ;;  %v138_v4 = vunpack.c.l.bf16 %v1637_v12  ;;  %1162 = vmatprep.subr.mxu0 %v731_v13  ;;  %v726_v56 = vld [vmem:[%s1966_s1 + $0x290] sm:$0xff]  ;;  %v725_v13 = vld [vmem:[%s1966_s1 + $0x288] sm:$0xff] }
  0x51   :  { %v600_v10 = vsel %vm576_vm4, %v421_v2, %v599_v55  ;;  %v144_v6 = vunpack.c.l.bf16 %v1642_v21  ;;  %v150_v38 = vunpack.c.l.bf16 %v1647_v16  ;;  %v156_v23 = vunpack.c.l.bf16 %v1655_v50  ;;  %1163 = vmatpush3.msra.mxu0 %v715_v18  ;;  %v713_v50 = vld [vmem:[%s1966_s1 + $0x228] sm:$0xff]  ;;  %v710_v3 = vld [vmem:[%s1966_s1 + $0x210] sm:$0xff] }
  0x52   :  { %v601_v7 = vsel %vm578_vm5, %v463_v5, %v600_v10  ;;  %v162_v8 = vunpack.c.l.bf16 %v1660_v19  ;;  %v168_v12 = vunpack.c.l.bf16 %v1665_v49  ;;  %v174_v24 = vunpack.c.l.bf16 %v1674_v53  ;;  %1164 = vmatprep.subr.mxu0 %v730_v61  ;;  %v709_v18 = vld [vmem:[%s1966_s1 + $0x208] sm:$0xff]  ;;  %v724_v61 = vld [vmem:[%s1966_s1 + $0x280] sm:$0xff] }
  0x53   :  { %v602_v21 = vsel %vm580_vm6, %v505_v63, %v601_v7  ;;  %v198_v26 = vmax.f32 %v84_v0, %v90_v15  ;;  %v240_v16 = vmax.f32 %v96_v17, %v102_v22  ;;  %v282_v27 = vmax.f32 %v108_v58, %v114_v59  ;;  %1165 = vmatpush3.msra.mxu0 %v714_v9  ;;  %v708_v9 = vld [vmem:[%s1966_s1 + $0x200] sm:$0xff]  ;;  %v1808_v7 = vld [vmem:[%s1965_s0 + $0x10] sm:$0xff] }
  0x54   :  { %881 = vmatprep.mubr.f32.mxu1 %v602_v21  ;;  %v324_v19 = vmax.f32 %v120_v54, %v126_v62  ;;  %v366_v49 = vmax.f32 %v132_v20, %v138_v4  ;;  %v408_v28 = vmax.f32 %v144_v6, %v150_v38  ;;  %v450_v53 = vmax.f32 %v156_v23, %v162_v8  ;;  %v1813_v8 = vld [vmem:[%s1965_s0 + $0x28] sm:$0xff] }
  0x55   :  { %v199_v30 = vrot.slane %v198_v26, 4  ;;  %v241_v31 = vrot.slane %v240_v16, 4  ;;  %v283_v32 = vrot.slane %v282_v27, 4  ;;  %v492_v33 = vmax.f32 %v168_v12, %v174_v24  ;;  %1166 = vmatprep.subr.mxu0 %v729_v25 }
  0x56   :  { %v325_v35 = vrot.slane %v324_v19, 4  ;;  %v367_v36 = vrot.slane %v366_v49, 4  ;;  %v409_v37 = vrot.slane %v408_v28, 4  ;;  %v451_v39 = vrot.slane %v450_v53, 4  ;;  %1167 = vmatpush3.msra.mxu0 %v713_v50 }
  0x57   :  { %v200_v41 = vmax.f32 %v198_v26, %v199_v30  ;;  %v242_v42 = vmax.f32 %v240_v16, %v241_v31  ;;  %v284_v43 = vmax.f32 %v282_v27, %v283_v32  ;;  %v493_v44 = vrot.slane %v492_v33, 4  ;;  %1168 = vmatprep.subr.mxu0 %v728_v29  ;;  %v1818_v26 = vld [vmem:[%s1965_s0 + $0x40] sm:$0xff]  ;;  %v1823_v16 = vld [vmem:[%s1965_s0 + $0x58] sm:$0xff]  ;;  %v1828_v27 = vld [vmem:[%s1965_s0 + $0x70] sm:$0xff] }
  0x58   :  { %v326_v46 = vmax.f32 %v324_v19, %v325_v35  ;;  %v368_v47 = vmax.f32 %v366_v49, %v367_v36  ;;  %v410_v48 = vmax.f32 %v408_v28, %v409_v37  ;;  %v452_v52 = vmax.f32 %v450_v53, %v451_v39  ;;  %1169 = vmatpush3.msra.mxu0 %v712_v34  ;;  %v1833_v53 = vld [vmem:[%s1965_s0 + $0x88] sm:$0xff]  ;;  %v1838_v29 = vld [vmem:[%s1965_s0 + $0xa0] sm:$0xff]  ;;  %v1843_v30 = vld [vmem:[%s1965_s0 + $0xb8] sm:$0xff] }
  0x59   :  { %v201_v57 = vrot.slane %v200_v41, 2  ;;  %v243_v60 = vrot.slane %v242_v42, 2  ;;  %v285_v1 = vrot.slane %v284_v43, 2  ;;  %v494_v2 = vmax.f32 %v492_v33, %v493_v44  ;;  %1170 = vmatprep.subr.mxu0 %v727_v40  ;;  %v1849_v33 = vld [vmem:[%s1965_s0 + $0xd0] sm:$0xff]  ;;  %v1854_v34 = vld [vmem:[%s1965_s0 + $0xe8] sm:$0xff]  ;;  %v1859_v35 = vld [vmem:[%s1965_s0 + $0x100] sm:$0xff] }
  0x5a   :  { %v327_v5 = vrot.slane %v326_v46, 2  ;;  %v369_v63 = vrot.slane %v368_v47, 2  ;;  %v411_v11 = vrot.slane %v410_v48, 2  ;;  %v453_v0 = vrot.slane %v452_v52, 2  ;;  %1171 = vmatpush3.msra.mxu0 %v711_v45  ;;  %v1867_v40 = vld [vmem:[%s1965_s0 + $0x118] sm:$0xff] }
  0x5b   :  { %v202_v14 = vmax.f32 %v200_v41, %v201_v57  ;;  %v244_v15 = vmax.f32 %v242_v42, %v243_v60  ;;  %v286_v17 = vmax.f32 %v284_v43, %v285_v1  ;;  %v495_v22 = vrot.slane %v494_v2, 2  ;;  %1172 = vmatprep.subr.mxu0 %v726_v56  ;;  %v1872_v41 = vld [vmem:[%s1965_s0 + $0x130] sm:$0xff]  ;;  %v1877_v42 = vld [vmem:[%s1965_s0 + $0x148] sm:$0xff] }
  0x5c   :  { %v328_v51 = vmax.f32 %v326_v46, %v327_v5  ;;  %v370_v58 = vmax.f32 %v368_v47, %v369_v63  ;;  %v412_v59 = vmax.f32 %v410_v48, %v411_v11  ;;  %v454_v54 = vmax.f32 %v452_v52, %v453_v0  ;;  %1173 = vmatpush3.msra.mxu0 %v710_v3  ;;  %v1886_v47 = vld [vmem:[%s1965_s0 + $0x160] sm:$0xff]  ;;  %v1891_v48 = vld [vmem:[%s1965_s0 + $0x178] sm:$0xff] }
  0x5d   :  { %v203_v55 = vrot.slane %v202_v14, 1  ;;  %v245_v62 = vrot.slane %v244_v15, 1  ;;  %v287_v20 = vrot.slane %v286_v17, 1  ;;  %v496_v4 = vmax.f32 %v494_v2, %v495_v22  ;;  %1174 = vmatprep.subr.mxu0 %v725_v13 }
  0x5e   :  { %v329_v10 = vrot.slane %v328_v51, 1  ;;  %v371_v6 = vrot.slane %v370_v58, 1  ;;  %v413_v38 = vrot.slane %v412_v59, 1  ;;  %v455_v23 = vrot.slane %v454_v54, 1  ;;  %1175 = vmatpush3.msra.mxu0 %v709_v18 }
  0x5f   :  { %v204_v12 = vmax.f32 %v202_v14, %v203_v55  ;;  %v246_v24 = vmax.f32 %v244_v15, %v245_v62  ;;  %v288_v25 = vmax.f32 %v286_v17, %v287_v20  ;;  %v497_v21 = vrot.slane %v496_v4, 1  ;;  %1176 = vmatprep.subr.mxu0 %v724_v61 }
  0x60   :  { %v330_v50 = vmax.f32 %v328_v51, %v329_v10  ;;  %v372_v19 = vmax.f32 %v370_v58, %v371_v6  ;;  %v414_v49 = vmax.f32 %v412_v59, %v413_v38  ;;  %v456_v28 = vmax.f32 %v454_v54, %v455_v23  ;;  %1177 = vmatpush3.msra.mxu0 %v708_v9 }
  0x61   :  { %v498_v31 = vmax.f32 %v496_v4, %v497_v21  ;;  %v589_v32 = vsel %vm568_vm0, %v246_v24, %v204_v12  ;;  %v87_v36 = vunpack.c.h.bf16 %v1808_v7  ;;  %v93_v37 = vunpack.c.h.bf16 %v1813_v8 }
  0x62   :  { %v590_v39 = vsel %vm570_vm1, %v288_v25, %v589_v32  ;;  %v99_v43 = vunpack.c.h.bf16 %v1818_v26  ;;  %v105_v44 = vunpack.c.h.bf16 %v1823_v16  ;;  %v111_v45 = vunpack.c.h.bf16 %v1828_v27 }
  0x63   :  { %v591_v46 = vsel %vm572_vm2, %v330_v50, %v590_v39  ;;  %v117_v52 = vunpack.c.h.bf16 %v1833_v53  ;;  %v123_v56 = vunpack.c.h.bf16 %v1838_v29  ;;  %v129_v57 = vunpack.c.h.bf16 %v1843_v30 }
  0x64   :  { %v592_v60 = vsel %vm574_vm3, %v372_v19, %v591_v46  ;;  %v135_v1 = vunpack.c.h.bf16 %v1849_v33  ;;  %v141_v2 = vunpack.c.h.bf16 %v1854_v34  ;;  %v147_v3 = vunpack.c.h.bf16 %v1859_v35 }
  0x65   :  { %v593_v5 = vsel %vm576_vm4, %v414_v49, %v592_v60  ;;  %v153_v63 = vunpack.c.h.bf16 %v1867_v40  ;;  %v159_v11 = vunpack.c.h.bf16 %v1872_v41  ;;  %v165_v0 = vunpack.c.h.bf16 %v1877_v42 }
  0x66   :  { %v594_v13 = vsel %vm578_vm5, %v456_v28, %v593_v5  ;;  %v171_v14 = vunpack.c.h.bf16 %v1886_v47  ;;  %v177_v15 = vunpack.c.h.bf16 %v1891_v48  ;;  %v219_v17 = vmax.f32 %v87_v36, %v93_v37 }
  0x67   :  { %v595_v22 = vsel %vm580_vm6, %v498_v31, %v594_v13  ;;  %v261_v18 = vmax.f32 %v99_v43, %v105_v44  ;;  %v303_v51 = vmax.f32 %v111_v45, %v117_v52  ;;  %v345_v58 = vmax.f32 %v123_v56, %v129_v57 }
  0x68   :  { %882 = vmatmul.mubr.f32.vlgmr.msra.gmra.mxu1 %v595_v22  ;;  %v220_v59 = vrot.slane %v219_v17, 4  ;;  %v387_v54 = vmax.f32 %v135_v1, %v141_v2  ;;  %v429_v61 = vmax.f32 %v147_v3, %v153_v63  ;;  %v471_v55 = vmax.f32 %v159_v11, %v165_v0 }
  0x69   :  { %v262_v62 = vrot.slane %v261_v18, 4  ;;  %v304_v20 = vrot.slane %v303_v51, 4  ;;  %v346_v4 = vrot.slane %v345_v58, 4  ;;  %v513_v9 = vmax.f32 %v171_v14, %v177_v15 }
  0x6a   :  { %v221_v10 = vmax.f32 %v219_v17, %v220_v59  ;;  %v388_v6 = vrot.slane %v387_v54, 4  ;;  %v430_v38 = vrot.slane %v429_v61, 4  ;;  %v472_v23 = vrot.slane %v471_v55, 4 }
  0x6b   :  { %v263_v12 = vmax.f32 %v261_v18, %v262_v62  ;;  %v305_v24 = vmax.f32 %v303_v51, %v304_v20  ;;  %v347_v25 = vmax.f32 %v345_v58, %v346_v4  ;;  %v514_v21 = vrot.slane %v513_v9, 4 }
  0x6c   :  { %v222_v50 = vrot.slane %v221_v10, 2  ;;  %v389_v19 = vmax.f32 %v387_v54, %v388_v6  ;;  %v431_v49 = vmax.f32 %v429_v61, %v430_v38  ;;  %v473_v28 = vmax.f32 %v471_v55, %v472_v23 }
  0x6d   :  { %v264_v31 = vrot.slane %v263_v12, 2  ;;  %v306_v32 = vrot.slane %v305_v24, 2  ;;  %v348_v36 = vrot.slane %v347_v25, 2  ;;  %v515_v37 = vmax.f32 %v513_v9, %v514_v21 }
  0x6e   :  { %v223_v39 = vmax.f32 %v221_v10, %v222_v50  ;;  %v390_v43 = vrot.slane %v389_v19, 2  ;;  %v432_v44 = vrot.slane %v431_v49, 2  ;;  %v474_v45 = vrot.slane %v473_v28, 2 }
  0x6f   :  { %v265_v46 = vmax.f32 %v263_v12, %v264_v31  ;;  %v307_v52 = vmax.f32 %v305_v24, %v306_v32  ;;  %v349_v56 = vmax.f32 %v347_v25, %v348_v36  ;;  %v516_v57 = vrot.slane %v515_v37, 2 }
  0x70   :  { %v224_v60 = vrot.slane %v223_v39, 1  ;;  %v391_v1 = vmax.f32 %v389_v19, %v390_v43  ;;  %v433_v2 = vmax.f32 %v431_v49, %v432_v44  ;;  %v475_v3 = vmax.f32 %v473_v28, %v474_v45 }
  0x71   :  { %v266_v5 = vrot.slane %v265_v46, 1  ;;  %v308_v63 = vrot.slane %v307_v52, 1  ;;  %v350_v11 = vrot.slane %v349_v56, 1  ;;  %v517_v0 = vmax.f32 %v515_v37, %v516_v57 }
  0x72   :  { %v225_v13 = vmax.f32 %v223_v39, %v224_v60  ;;  %v392_v14 = vrot.slane %v391_v1, 1  ;;  %v434_v15 = vrot.slane %v433_v2, 1  ;;  %v476_v17 = vrot.slane %v475_v3, 1 }
  0x73   :  { %v267_v22 = vmax.f32 %v265_v46, %v266_v5  ;;  %v309_v18 = vmax.f32 %v307_v52, %v308_v63  ;;  %v351_v51 = vmax.f32 %v349_v56, %v350_v11  ;;  %v518_v58 = vrot.slane %v517_v0, 1 }
  0x74   :  { %v393_v59 = vmax.f32 %v391_v1, %v392_v14  ;;  %v435_v54 = vmax.f32 %v433_v2, %v434_v15  ;;  %v477_v61 = vmax.f32 %v475_v3, %v476_v17  ;;  %v86_v55 = vunpack.c.l.bf16 %v1808_v7 }
  0x75   :  { %v519_v62 = vmax.f32 %v517_v0, %v518_v58  ;;  %v610_v20 = vsel %vm568_vm0, %v267_v22, %v225_v13  ;;  %v92_v4 = vunpack.c.l.bf16 %v1813_v8  ;;  %v98_v9 = vunpack.c.l.bf16 %v1818_v26 }
  0x76   :  { %v611_v10 = vsel %vm570_vm1, %v309_v18, %v610_v20  ;;  %v104_v6 = vunpack.c.l.bf16 %v1823_v16  ;;  %v110_v38 = vunpack.c.l.bf16 %v1828_v27  ;;  %v116_v23 = vunpack.c.l.bf16 %v1833_v53 }
  0x77   :  { %v612_v12 = vsel %vm572_vm2, %v351_v51, %v611_v10  ;;  %v122_v24 = vunpack.c.l.bf16 %v1838_v29  ;;  %v128_v7 = vunpack.c.l.bf16 %v1843_v30  ;;  %v134_v25 = vunpack.c.l.bf16 %v1849_v33 }
  0x78   :  { %v613_v8 = vsel %vm574_vm3, %v393_v59, %v612_v12  ;;  %v140_v26 = vunpack.c.l.bf16 %v1854_v34  ;;  %v146_v21 = vunpack.c.l.bf16 %v1859_v35  ;;  %v152_v16 = vunpack.c.l.bf16 %v1867_v40 }
  0x79   :  { %v614_v27 = vsel %vm576_vm4, %v435_v54, %v613_v8  ;;  %v158_v53 = vunpack.c.l.bf16 %v1872_v41  ;;  %v164_v50 = vunpack.c.l.bf16 %v1877_v42  ;;  %v170_v29 = vunpack.c.l.bf16 %v1886_v47 }
  0x7a   :  { %v615_v30 = vsel %vm578_vm5, %v477_v61, %v614_v27  ;;  %v176_v33 = vunpack.c.l.bf16 %v1891_v48  ;;  %v212_v19 = vmax.f32 %v86_v55, %v92_v4  ;;  %v254_v49 = vmax.f32 %v98_v9, %v104_v6 }
  0x7b   :  { %v616_v34 = vsel %vm580_vm6, %v519_v62, %v615_v30  ;;  %v296_v28 = vmax.f32 %v110_v38, %v116_v23  ;;  %v338_v35 = vmax.f32 %v122_v24, %v128_v7  ;;  %v380_v31 = vmax.f32 %v134_v25, %v140_v26 }
  0x7c   :  { %951 = vmatprep.mubr.f32.mxu0 %v616_v34  ;;  %v213_v40 = vrot.slane %v212_v19, 4  ;;  %v255_v32 = vrot.slane %v254_v49, 4  ;;  %v422_v36 = vmax.f32 %v146_v21, %v152_v16  ;;  %v464_v41 = vmax.f32 %v158_v53, %v164_v50  ;;  %v961_v34 = vld [vmem:[%s1969_s4 + $0x10] sm:$0xff] }
  0x7d   :  { %v297_v37 = vrot.slane %v296_v28, 4  ;;  %v339_v42 = vrot.slane %v338_v35, 4  ;;  %v381_v39 = vrot.slane %v380_v31, 4  ;;  %v506_v47 = vmax.f32 %v170_v29, %v176_v33 }
  0x7e   :  { %v214_v43 = vmax.f32 %v212_v19, %v213_v40  ;;  %v256_v44 = vmax.f32 %v254_v49, %v255_v32  ;;  %v423_v45 = vrot.slane %v422_v36, 4  ;;  %v465_v48 = vrot.slane %v464_v41, 4  ;;  %v962_v49 = vld [vmem:[%s1969_s4 + $0x18] sm:$0xff] }
  0x7f   :  { %v298_v46 = vmax.f32 %v296_v28, %v297_v37  ;;  %v340_v52 = vmax.f32 %v338_v35, %v339_v42  ;;  %v382_v56 = vmax.f32 %v380_v31, %v381_v39  ;;  %v507_v57 = vrot.slane %v506_v47, 4  ;;  %v960_v28 = vld [vmem:[%s1969_s4 + $0x8] sm:$0xff]  ;;  %v959_v35 = vld [vmem:[%s1969_s4] sm:$0xff] }
  0x80   :  { %v215_v60 = vrot.slane %v214_v43, 2  ;;  %v257_v1 = vrot.slane %v256_v44, 2  ;;  %v424_v2 = vmax.f32 %v422_v36, %v423_v45  ;;  %v466_v3 = vmax.f32 %v464_v41, %v465_v48  ;;  %v1073_v41 = vld [vmem:[%s1967_s2] ss:$0 sm:$0xff]  ;;  %s1228_s2 = smov [#allocation3]  }
  0x81   :  { %v299_v5 = vrot.slane %v298_v46, 2  ;;  %v341_v63 = vrot.slane %v340_v52, 2  ;;  %v383_v11 = vrot.slane %v382_v56, 2  ;;  %v508_v0 = vmax.f32 %v506_v47, %v507_v57  ;;  %v957_v48 = vld [vmem:[%s1968_s3] sm:$0xff]  ;;  %s1065_s3 = sshll.u32 %s1228_s2, 4  ;;  %s1066_s3 = int_to_ptr.vmem [resolvable:$true] %s1065_s3 }
  0x82   :  { %v216_v13 = vmax.f32 %v214_v43, %v215_v60  ;;  %v258_v14 = vmax.f32 %v256_v44, %v257_v1  ;;  %v425_v15 = vrot.slane %v424_v2, 2  ;;  %v467_v17 = vrot.slane %v466_v3, 2  ;;  %p1209_p1 = scmp.lt.s32.totalorder %s1066_s3, %s1066_s3 }
  0x83   :  { %v300_v22 = vmax.f32 %v298_v46, %v299_v5  ;;  %v342_v18 = vmax.f32 %v340_v52, %v341_v63  ;;  %v384_v51 = vmax.f32 %v382_v56, %v383_v11  ;;  %v509_v58 = vrot.slane %v508_v0, 2  ;;  %v1074_v56 = vld [vmem:[%s1970_s5] ss:$0 sm:$0xff]  ;;  %s1204_s5 = scalar_lea.vmem %s1066_s3, 128 }
  0x84   :  { %v217_v59 = vrot.slane %v216_v13, 1  ;;  %v259_v54 = vrot.slane %v258_v14, 1  ;;  %v426_v61 = vmax.f32 %v424_v2, %v425_v15  ;;  %v468_v55 = vmax.f32 %v466_v3, %v467_v17  ;;  %p1205_p0 = scmp.ne.s32.totalorder %s1066_s3, %s1204_s5  ;;  %p1210_p2 = scmp.lt.s32.totalorder %s1204_s5, %s1204_s5 }
  0x85   :  { %v301_v62 = vrot.slane %v300_v22, 1  ;;  %v343_v20 = vrot.slane %v342_v18, 1  ;;  %v385_v4 = vrot.slane %v384_v51, 1  ;;  %v510_v9 = vmax.f32 %v508_v0, %v509_v58 }
  0x86   :  { %v218_v10 = vmax.f32 %v216_v13, %v217_v59  ;;  %v260_v6 = vmax.f32 %v258_v14, %v259_v54  ;;  %v427_v38 = vrot.slane %v426_v61, 1  ;;  %v469_v23 = vrot.slane %v468_v55, 1  ;;  %p1211_p3 = por %p1210_p2, %p1209_p1 }
  0x87   :  { %v302_v12 = vmax.f32 %v300_v22, %v301_v62  ;;  %v344_v24 = vmax.f32 %v342_v18, %v343_v20  ;;  %v386_v7 = vmax.f32 %v384_v51, %v385_v4  ;;  %v511_v25 = vrot.slane %v510_v9, 1 }
  0x88   :  { %v428_v8 = vmax.f32 %v426_v61, %v427_v38  ;;  %v603_v26 = vsel %vm568_vm0, %v260_v6, %v218_v10  ;;  %v470_v21 = vmax.f32 %v468_v55, %v469_v23  ;;  %v1226_v19 = vmov 0.0   ;;  %p1212_p4 = pnand %p1211_p3, %p1205_p0 }
  0x89   :  { %v604_v16 = vsel %vm570_vm1, %v302_v12, %v603_v26  ;;  %v512_v27 = vmax.f32 %v510_v9, %v511_v25  ;;  %1186 = vmatprep.subr.mxu1 %v1226_v19  ;;  %vm1227_vm7 = vmmov 0   ;;  %vm970_vm8 = vcmask 261120  }
  0x8a   :  { %v605_v53 = vsel %vm572_vm2, %v344_v24, %v604_v16  ;;  %1187 = vmatpush3.msra.mxu1 %v962_v49  ;;  %1194 = vmatprep.mubr.msk.f32.mxu1 %vm1227_vm7, %v1226_v19  ;;  %vm1044_vm9 = vcmask 64512  }
  0x8b   :  { %v606_v50 = vsel %vm574_vm3, %v386_v7, %v605_v53  ;;  %1188 = vmatprep.subr.mxu1 %v1226_v19 }
  0x8c   :  { %v607_v29 = vsel %vm576_vm4, %v428_v8, %v606_v50  ;;  %1189 = vmatpush3.msra.mxu1 %v961_v34 }
  0x8d   :  { %v608_v30 = vsel %vm578_vm5, %v470_v21, %v607_v29  ;;  %1190 = vmatprep.subr.mxu1 %v1226_v19 }
  0x8e   :  { %v609_v33 = vsel %vm580_vm6, %v512_v27, %v608_v30  ;;  %1191 = vmatpush3.msra.mxu1 %v960_v28 }
  0x8f   :  { %952 = vmatmul.mubr.f32.vlgmr.msra.gmra.mxu0 %v609_v33  ;;  %1192 = vmatprep.subr.mxu1 %v1226_v19 }
  0x90   :  { %1193 = vmatpush3.msra.mxu1 %v959_v35 }
 0x100   :  { %v1108_v31 = vpop.f32.mrf.mxu0 }
 0x102   :  { %v1109_v40 = vpop.f32.mrf.mxu0 }
 0x103   :  { %v1110_v36 = vadd.f32 %v1109_v40, %v1108_v31 }
 0x105   :  { %v814_v42 = vadd.f32 %v1110_v36, %v1073_v41 }
 0x128   :  { %v1143_v32 = vpop.f32.mrf.mxu1 }
 0x12a   :  { %v1144_v37 = vpop.f32.mrf.mxu1 }
 0x12b   :  { %v1145_v39 = vadd.f32 %v1144_v37, %v1143_v32 }
 0x12d   :  { %v884_v44 = vadd.f32 %v1145_v39, %v814_v42 }
 0x14f   :  { %v1178_v47 = vpop.f32.mrf.mxu0 }
 0x151   :  { %v1179_v43 = vpop.f32.mrf.mxu0 }
 0x152   :  { %v1180_v45 = vadd.f32 %v1179_v43, %v1178_v47 }
 0x154   :  { %v954_v46 = vadd.f32 %v1180_v45, %v884_v44 }
 0x156   :  { %v958_v52 = vadd.f32 %v957_v48, %v954_v46 }
 0x158   :  { %1195 = vmatmul.mubr.msk.f32.vlgmr.msra.gmra.mxu1 %vm970_vm8, %v958_v52 }
 0x218   :  { %v1040_v57 = vpop.f32.mrf.mxu1 }
 0x219   :  { %v1041_v60 = vadd.f32 %v1074_v56, %v1040_v57 }
 0x21a   :  { %v1196_v1 = vpop.f32.mrf.mxu1 }
 0x21b   :  { %v1045_v2 = vsel %vm1044_vm9, %v1041_v60, -inf }
 0x21c   :  { %1046 = vmax.xlane.f32.xlu0 %v1045_v2 }
 0x2a5   :  { %v1047_v3 = vpop.xlane.xlu0 %1046 }
 0x2a6   :  { %v1048_v5 = vsub.f32 %v1041_v60, %v1047_v3 }
 0x2a8   :  { %v1049_v63 = vmul.f32 1.442695, %v1048_v5 }
 0x2aa   :  { %1200 = vpow2.f32 %v1049_v63 }
 0x2b7   :  { %v1201_v11 = vpop.eup %1200 }
 0x2b8   :  { %v1051_v0 = vsel %vm1044_vm9, %v1201_v11, 0.0 }
 0x2b9   :  { %1052 = vadd.xlane.f32.xlu0 %v1051_v0 }
 0x342   :  { %v1053_v13 = vpop.xlane.xlu0 %1052 }
 0x343   :  { %1202 = vlog2.f32 %v1053_v13 }
 0x350   :  { %v1203_v14 = vpop.eup %1202 }
 0x351   :  { %v1055_v15 = vmul.f32 0.6931472, %v1203_v14 }
 0x353   :  { %v1056_v17 = vadd.f32 %v1055_v15, %v1047_v3 }
 0x355   :  { %v1057_v22 = vsub.f32 %v1041_v60, %v1056_v17 }
 0x357   :  { %1058 = vst.msk [vmem:[#allocation3] sm:$0xff] %vm1044_vm9, %v1057_v22 }
 0x358   :  { %1215 = shalt.err (!%p1212_p4)
}
 0x359   :  { %1068 = dma.vmem_to_hbm [thread:$0]  %s1066_s3, 128, %s1971_s6, [#allocation4]  }
 0x35a   :  { %1224 = dma.done.wait [#allocation4], 128  }
 0x35b   :  { %1225 = vsyncadd [#allocation4], 4294967168 }
 0x35c   :  { %1072 = vsyncpa [#allocation4], 1 }

</bundles_post_ra>
